<compile_context>
chip_gen: v7x
topology: tpu7x:2x2x1
jax: 0.10.0
libtpu: 0.0.40
codegen_flags: <defaults>
</compile_context>

<pallas_src>
import jax
import jax.numpy as jnp
from jax.experimental import pallas as pl
from jax.experimental.pallas import tpu as pltpu


# Safe across generations: v5e/v6e have 128 MiB physical VMEM, v7x has 64 MiB.
_VMEM_LIMIT_BYTES = 48 * 1024 * 1024


def _soft_ce_kernel(y_ref, z_ref, loss_ref):
    """Per-row soft cross entropy for one (tile_n, C) block."""
    z = z_ref[...].astype(jnp.float32)
    y = y_ref[...].astype(jnp.float32)

    # Numerically stable log-sum-exp along the class (last / lane) axis.
    m = jnp.max(z, axis=-1, keepdims=True)
    shifted = z - m
    lse = jnp.log(jnp.sum(jnp.exp(shifted), axis=-1, keepdims=True))

    # -sum(y * (shifted - lse)) == lse*sum(y) - sum(y*shifted)
    sum_y = jnp.sum(y, axis=-1, keepdims=True)
    sum_ys = jnp.sum(y * shifted, axis=-1, keepdims=True)
    loss_ref[...] = lse * sum_y - sum_ys                      # (tile_n, 1)


def _pick_tile_n(n, c, vmem_limit_bytes=_VMEM_LIMIT_BYTES):
    """Row tile sized from the VMEM budget, sublane-aligned, minimal padding."""
    # ~ (2 inputs x 2 pipeline buffers + ~5 live temporaries) f32 per element.
    bytes_per_row = 36 * c
    cap = (vmem_limit_bytes // 2) // bytes_per_row            # use ~50% of limit
    cap = max(8, min(cap, 1 << 15))
    if n <= cap:
        return n                  # single block (block == full array is legal)
    grid_n = pl.cdiv(n, cap)
    tile = pl.cdiv(n, grid_n)     # even split -> at most a few padded rows
    return ((tile + 7) // 8) * 8  # sublane-align


def soft_cross_entropy(y, z, *, reduce=True, tile_n=None):
    """Pallas implementation of SoftCrossEntropy.forward."""
    assert y.shape == z.shape and y.ndim == 2
    n, c = y.shape

    if tile_n is None:
        tile_n = _pick_tile_n(n, c)
    assert tile_n == n or tile_n % 8 == 0, "row tile must be sublane-aligned"

    grid_n = pl.cdiv(n, tile_n)
    n_pad = grid_n * tile_n
    if n_pad != n:
        # Padded rows have y == 0 -> loss contribution is exactly 0.
        pad = ((0, n_pad - n), (0, 0))
        y = jnp.pad(y, pad)
        z = jnp.pad(z, pad)

    per_row = pl.pallas_call(
        _soft_ce_kernel,
        out_shape=jax.ShapeDtypeStruct((n_pad, 1), jnp.float32),
        grid_spec=pltpu.PrefetchScalarGridSpec(
            num_scalar_prefetch=0,
            grid=(grid_n,),
            in_specs=[
                pl.BlockSpec((tile_n, c), lambda i: (i, 0)),
                pl.BlockSpec((tile_n, c), lambda i: (i, 0)),
            ],
            # Output is tiny (4 bytes/row) relative to the 8*C bytes/row read,
            # so the narrow last dim is an acceptable store path.
            out_specs=pl.BlockSpec((tile_n, 1), lambda i: (i, 0)),
        ),
        compiler_params=pltpu.CompilerParams(
            dimension_semantics=("parallel",),     # independent tiles -> megacore OK
            vmem_limit_bytes=_VMEM_LIMIT_BYTES,
        ),
    )(y, z)

    per_row = per_row[:n, 0]
    if reduce:
        return jnp.mean(per_row)
    return per_row


if __name__ == "__main__":
    key = jax.random.PRNGKey(0)
    k_y, k_z, k_y2, k_z2 = jax.random.split(key, 4)

    # Small demo shapes consistent with the module: (N, C) soft targets/logits.
    N, C = 8, 32
    y_logits = jax.random.normal(k_y, (N, C), dtype=jnp.float32)
    y = jax.nn.softmax(y_logits, axis=-1)         # soft label distribution
    z = jax.random.normal(k_z, (N, C), dtype=jnp.float32)

    out_mean = jax.block_until_ready(soft_cross_entropy(y, z, reduce=True))
    out_vec = jax.block_until_ready(soft_cross_entropy(y, z, reduce=False))

    ref_vec = -jnp.sum(y * jax.nn.log_softmax(z, axis=-1), axis=-1)
    ref_mean = ref_vec.mean()
    assert jnp.allclose(out_vec, ref_vec, atol=1e-5, rtol=1e-5)
    assert jnp.allclose(out_mean, ref_mean, atol=1e-5, rtol=1e-5)

    # Also exercise the multi-tile + ragged-row (padding) path.
    N2, C2 = 20, 32
    y2 = jax.nn.softmax(jax.random.normal(k_y2, (N2, C2), jnp.float32), axis=-1)
    z2 = jax.random.normal(k_z2, (N2, C2), dtype=jnp.float32)
    out2 = jax.block_until_ready(soft_cross_entropy(y2, z2, reduce=False, tile_n=8))
    mean2 = jax.block_until_ready(soft_cross_entropy(y2, z2, reduce=True, tile_n=8))
    ref2 = -jnp.sum(y2 * jax.nn.log_softmax(z2, axis=-1), axis=-1)
    assert jnp.allclose(out2, ref2, atol=1e-5, rtol=1e-5)
    assert jnp.allclose(mean2, ref2.mean(), atol=1e-5, rtol=1e-5)

    print("KERNEL_OK")
</pallas_src>

<mosaic_0001>
module attributes {stable_mosaic.version = 11 : i64} {
  func.func @_soft_ce_kernel(%arg0: i32, %arg1: memref<8x32xf32, #tpu.memory_space<vmem>>, %arg2: memref<8x32xf32, #tpu.memory_space<vmem>>, %arg3: memref<8x1xf32, #tpu.memory_space<vmem>>) attributes {dimension_semantics = [#tpu.dimension_semantics<parallel>], iteration_bounds = array<i64: 1>, scalar_prefetch = 0 : i64, scratch_operands = 0 : i64, tpu.core_type = #tpu.core_type<tc>, window_params = [{transform_indices = @transform_0, window_bounds = array<i64: 8, 32>}, {transform_indices = @transform_1, window_bounds = array<i64: 8, 32>}, {transform_indices = @transform_2, window_bounds = array<i64: 8, 1>}]} {
    %c0 = arith.constant 0 : index
    %c0_0 = arith.constant 0 : index
    %0 = vector.load %arg2[%c0, %c0_0] : memref<8x32xf32, #tpu.memory_space<vmem>>, vector<8x32xf32>
    %c0_1 = arith.constant 0 : index
    %c0_2 = arith.constant 0 : index
    %1 = vector.load %arg1[%c0_1, %c0_2] : memref<8x32xf32, #tpu.memory_space<vmem>>, vector<8x32xf32>
    %cst = arith.constant dense<0xFF800000> : vector<8xf32>
    %2 = vector.multi_reduction <maximumf>, %0, %cst [1] : vector<8x32xf32> to vector<8xf32>
    %3 = vector.shape_cast %2 : vector<8xf32> to vector<8x1xf32>
    %4 = vector.broadcast %3 : vector<8x1xf32> to vector<8x32xf32>
    %5 = arith.subf %0, %4 : vector<8x32xf32>
    %6 = math.exp %5 : vector<8x32xf32>
    %cst_3 = arith.constant dense<0.000000e+00> : vector<8xf32>
    %7 = vector.multi_reduction <add>, %6, %cst_3 [1] : vector<8x32xf32> to vector<8xf32>
    %8 = vector.shape_cast %7 : vector<8xf32> to vector<8x1xf32>
    %9 = math.log %8 : vector<8x1xf32>
    %cst_4 = arith.constant dense<0.000000e+00> : vector<8xf32>
    %10 = vector.multi_reduction <add>, %1, %cst_4 [1] : vector<8x32xf32> to vector<8xf32>
    %11 = vector.shape_cast %10 : vector<8xf32> to vector<8x1xf32>
    %12 = arith.mulf %1, %5 : vector<8x32xf32>
    %cst_5 = arith.constant dense<0.000000e+00> : vector<8xf32>
    %13 = vector.multi_reduction <add>, %12, %cst_5 [1] : vector<8x32xf32> to vector<8xf32>
    %14 = vector.shape_cast %13 : vector<8xf32> to vector<8x1xf32>
    %15 = arith.mulf %9, %11 : vector<8x1xf32>
    %16 = arith.subf %15, %14 : vector<8x1xf32>
    %c0_6 = arith.constant 0 : index
    %c0_7 = arith.constant 0 : index
    %17 = vector.load %arg3[%c0_6, %c0_7] : memref<8x1xf32, #tpu.memory_space<vmem>>, vector<8x1xf32>
    tpu.vector_store %arg3[%c0_6, %c0_7], %16 {strides = array<i32>} : memref<8x1xf32, #tpu.memory_space<vmem>>, vector<8x1xf32>,
    return
  }
  func.func @transform_0(%arg0: i32) -> (i32, i32) {
    %c0_i32 = arith.constant 0 : i32
    %c0_i32_0 = arith.constant 0 : i32
    return %arg0, %c0_i32 : i32, i32
  }
  func.func @transform_1(%arg0: i32) -> (i32, i32) {
    %c0_i32 = arith.constant 0 : i32
    %c0_i32_0 = arith.constant 0 : i32
    return %arg0, %c0_i32 : i32, i32
  }
  func.func @transform_2(%arg0: i32) -> (i32, i32) {
    %c0_i32 = arith.constant 0 : i32
    %c0_i32_0 = arith.constant 0 : i32
    return %arg0, %c0_i32 : i32, i32
  }
}

</mosaic_0001>

<bundles_post_ra>
// kernel: tpu_custom_call.1
= control target key start
LH: loop header
LB: loop body
LE: loop exit
PB: predicated region body
PF: predicated region fallthrough
CT: control target
= control target key end

     0   :  { %7 = vsyncpa [#allocation3], 0  ;;  %s164_s0 = inlined_call_operand.hbm [shape: f32[8,32], index: 0, kind: input, shape index: {}]   ;;  %s165_s1 = inlined_call_operand.hbm [shape: f32[8,32], index: 1, kind: input, shape index: {}]   ;;  %s166_s2 = inlined_call_operand.vmem [shape: f32[8,1], index: 2, kind: output, shape index: {}]  }
   0x1   :  { %8 = vsyncpa [#allocation5], 0  ;;  %s120_s9 = smov [#allocation2]   ;;  %s121_s11 = smov [#allocation4]  }
   0x2   :  { %s15_s10 = sshll.u32 %s120_s9, 4  ;;  %s25_s12 = sshll.u32 %s121_s11, 4  ;;  %s16_s10 = int_to_ptr.vmem [resolvable:$true] %s15_s10  ;;  %s26_s12 = int_to_ptr.vmem [resolvable:$true] %s25_s12 }
   0x3   :  { %s72_s15 = scalar_lea.hbm %s164_s0, 128 }
   0x4   :  { %p73_p0 = scmp.ne.s32.totalorder %s164_s0, %s72_s15  ;;  %p76_p1 = scmp.lt.u32.totalorder %s72_s15, %s164_s0 }
   0x6   :  { %p78_p2 = pnand %p76_p1, %p73_p0 }
   0x8   :  { %81 = shalt.err (!%p78_p2)
}
   0x9   :  { %s82_s20 = scalar_lea.vmem %s16_s10, 128  ;;  %p87_p4 = scmp.lt.s32.totalorder %s16_s10, %s16_s10 }
   0xa   :  { %p83_p3 = scmp.ne.s32.totalorder %s16_s10, %s82_s20  ;;  %p88_p5 = scmp.lt.s32.totalorder %s82_s20, %s82_s20 }
   0xc   :  { %p89_p6 = por %p88_p5, %p87_p4 }
   0xe   :  { %p90_p7 = pnand %p89_p6, %p83_p3 }
  0x10   :  { %93 = shalt.err (!%p90_p7)
}
  0x11   :  { %18 = dma.hbm_to_vmem [thread:$0]  %s164_s0, 128, %s16_s10, [#allocation3]  }
  0x12   :  { %s94_s25 = scalar_lea.hbm %s165_s1, 128 }
  0x13   :  { %p95_p8 = scmp.ne.s32.totalorder %s165_s1, %s94_s25  ;;  %p98_p9 = scmp.lt.u32.totalorder %s94_s25, %s165_s1 }
  0x15   :  { %p100_p10 = pnand %p98_p9, %p95_p8 }
  0x17   :  { %103 = shalt.err (!%p100_p10)
}
  0x18   :  { %s104_s30 = scalar_lea.vmem %s26_s12, 128  ;;  %p109_p12 = scmp.lt.s32.totalorder %s26_s12, %s26_s12 }
  0x19   :  { %p105_p11 = scmp.ne.s32.totalorder %s26_s12, %s104_s30  ;;  %p110_p13 = scmp.lt.s32.totalorder %s104_s30, %s104_s30 }
  0x1b   :  { %p111_p0 = por %p110_p13, %p109_p12 }
  0x1d   :  { %p112_p1 = pnand %p111_p0, %p105_p11 }
  0x1f   :  { %115 = shalt.err (!%p112_p1)
}
  0x20   :  { %28 = dma.hbm_to_vmem [thread:$0]  %s165_s1, 128, %s26_s12, [#allocation5]  }
  0x21   :  { %116 = dma.done.wait [#allocation3], 128  }
  0x22   :  { %117 = vsyncadd [#allocation3], 4294967168 }
  0x23   :  { %118 = dma.done.wait [#allocation5], 128  }
  0x24   :  { %119 = vsyncadd [#allocation5], 4294967168  ;;  %vm37_vm0 = vcmask 261120   ;;  %v35_v0 = vld [vmem:[#allocation4] sm:$0xff]  ;;  %v36_v2 = vld [vmem:[#allocation2] sm:$0xff]  ;;  %vm58_vm1 = vcmask 7168  }
  0x25   :  { %v38_v1 = vsel %vm37_vm0, %v35_v0, -inf  ;;  %v49_v3 = vsel %vm37_vm0, %v36_v2, 0.0 }
  0x26   :  { %39 = vmax.xlane.f32.xlu0 %v38_v1  ;;  %50 = vadd.xlane.f32.xlu1 %v49_v3 }
  0xb3   :  { %v40_v4 = vpop.xlane.xlu0 %39  ;;  %v51_v12 = vpop.xlane.xlu1 %50 }
  0xb4   :  { %v41_v5 = vsub.f32 %v35_v0, %v40_v4 }
  0xb6   :  { %v42_v6 = vmul.f32 1.442695, %v41_v5  ;;  %v52_v7 = vmul.f32 %v41_v5, %v36_v2 }
  0xb8   :  { %68 = vpow2.f32 %v42_v6  ;;  %v53_v8 = vsel %vm37_vm0, %v52_v7, 0.0 }
  0xb9   :  { %54 = vadd.xlane.f32.xlu1 %v53_v8 }
  0xc2   :  { %v69_v9 = vpop.eup %68 }
  0xc3   :  { %v44_v10 = vsel %vm37_vm0, %v69_v9, 0.0 }
  0xc4   :  { %45 = vadd.xlane.f32.xlu0 %v44_v10 }
 0x146   :  { %v55_v16 = vpop.xlane.xlu1 %54 }
 0x151   :  { %v46_v11 = vpop.xlane.xlu0 %45 }
 0x152   :  { %70 = vlog2.f32 %v46_v11 }
 0x15c   :  { %v71_v13 = vpop.eup %70 }
 0x15d   :  { %v48_v14 = vmul.f32 0.6931472, %v71_v13 }
 0x15f   :  { %v56_v15 = vmul.f32 %v51_v12, %v48_v14 }
 0x161   :  { %v57_v17 = vsub.f32 %v56_v15, %v55_v16 }
 0x163   :  { %59 = vst.msk [vmem:[%s166_s2] sm:$0xff] %vm58_vm1, %v57_v17 }
 0x164   :  { %64 = vsyncpa [#allocation3], 1 }
 0x165   :  { %65 = vsyncpa [#allocation5], 1 }

</bundles_post_ra>
